<compile_context>
chip_gen: v7x
topology: tpu7x:2x2x1
jax: 0.10.0
libtpu: 0.0.40
codegen_flags: <defaults>
</compile_context>

<pallas_src>
import functools

import jax
import jax.numpy as jnp
from jax import lax
from jax.experimental import pallas as pl
from jax.experimental.pallas import tpu as pltpu

LANE = 128


# ----------------------------- compute helpers (used inside the kernel) ------

def _leaky_relu(x, slope=0.2):
    return jnp.where(x >= 0, x, slope * x)


def _elu(x):
    # exp only on the non-positive branch so the discarded lane stays finite.
    return jnp.where(x > 0, x, jnp.exp(jnp.minimum(x, 0.0)) - 1.0)


def _graph_norm(x, weight, bias, mean_scale, eps=1e-5):
    mean = jnp.mean(x, axis=0, keepdims=True)
    centered = x - mean * mean_scale
    var = jnp.mean(centered * centered, axis=0, keepdims=True)
    return weight * centered * lax.rsqrt(var + eps) + bias


def _gat_attention(h, adj, a_both, bias, heads, ch):
    """Dense-adjacency GAT attention on an already-projected h.

    h:      [N, H*C]  f32 (projected features)
    adj:    [N, N]    bf16, adj[i, j] = 1 iff edge j -> i (self loops included)
    a_both: [2H, H*C] rows 0..H-1 = a_src (block diag), rows H..2H-1 = a_dst
    bias:   [1, H*C]
    """
    hb = h.astype(jnp.bfloat16)
    s = lax.dot_general(a_both.astype(jnp.bfloat16), hb, (((1,), (1,)), ((), ())),
                        preferred_element_type=jnp.float32)              # [2H, N]
    s_src = s[0:heads]                                                     # [H, N] source j
    s_dst = s[heads:2 * heads]                                             # [H, N] target i
    # all-heads logits; masking is done only post-exp via * adj (rowmax cancels).
    e = _leaky_relu(s_dst[:, :, None] + s_src[:, None, :])                 # [H, N, N]
    e = e - jnp.max(e, axis=-1, keepdims=True)
    p = jnp.exp(e) * adj[None, :, :]
    attn = p * pl.reciprocal(jnp.sum(p, axis=-1, keepdims=True), approx=True)
    attn_b = attn.astype(jnp.bfloat16)
    if heads == 1:
        out = jnp.dot(attn_b[0], hb, preferred_element_type=jnp.float32)
    else:
        # head-major rhs + ONE batched matmul over heads (no serial MXU chain).
        h_hm = jnp.stack([hb[:, hd * ch:(hd + 1) * ch] for hd in range(heads)],
                         axis=0)                                           # [H, N, C]
        agg = jnp.einsum('hij,hjc->hic', attn_b, h_hm,
                         preferred_element_type=jnp.float32)               # [H, N, C]
        out = jnp.concatenate([agg[hd] for hd in range(heads)], axis=1)    # [N, H*C]
    return out + bias


def _gat_layer(x, adj, w, a_both, bias, heads, ch):
    h = jnp.dot(x.astype(jnp.bfloat16), w.astype(jnp.bfloat16),
                preferred_element_type=jnp.float32)                        # [N, H*C]
    return _gat_attention(h, adj, a_both, bias, heads, ch)


# ----------------------------- Pallas kernel ---------------------------------

def improved_gnn_kernel(adj_ref, p_ref, out_ref, *, offsets, heads, hid, out_ch):
    adj = adj_ref[...]                                   # [N, N] bf16
    prm = p_ref[...]                                     # [P, 128] packed params + x

    def get(name):
        r0, nr, nc = offsets[name]                       # r0 is always 8-row aligned
        return prm[r0:r0 + nr, 0:nc]

    hc = heads * hid
    x = get("x")                                         # [N, in_ch] f32

    # conv1 input projection fused with res_fc (both consume x): one MXU op.
    w1res = get("w1res")                                 # [in_ch, hc + out_ch]
    comb = jnp.dot(x.astype(jnp.bfloat16), w1res.astype(jnp.bfloat16),
                   preferred_element_type=jnp.float32)   # [N, hc + out_ch]
    res = comb[:, hc:hc + out_ch] + get("res_b")

    h = _gat_attention(comb[:, 0:hc], adj, get("a1"), get("b1"), heads, hid)
    h = _elu(_graph_norm(h, get("g1_w"), get("g1_b"), get("g1_ms")))
    # TODO(synk): F.dropout / GATConv attention dropout omitted (eval-mode identity).
    h = _gat_layer(h, adj, get("w2"), get("a2"), get("b2"), 1, hid)
    h = _elu(_graph_norm(h, get("g2_w"), get("g2_b"), get("g2_ms")))
    h = _gat_layer(h, adj, get("w3"), get("a3"), get("b3"), 1, out_ch)

    final = h + res                                      # [N, OUT_CH]
    n = final.shape[0]
    pad = out_ref.shape[1] - out_ch
    # lane-dense store: write a full [N, 128] slab (no masked vst)
    out_ref[...] = jnp.concatenate(
        [final, jnp.zeros((n, pad), jnp.float32)], axis=1)


# ----------------------------- wrapper / params (plain-JAX glue) -------------

def _block_diag_att(a):
    """[H, C] attention vectors -> [H, H*C] block-diagonal matrix."""
    H, C = a.shape
    out = jnp.zeros((H, H * C), jnp.float32)
    for hd in range(H):
        out = out.at[hd, hd * C:(hd + 1) * C].set(a[hd])
    return out


def init_params(key, in_ch, hid, out_ch, heads):
    ks = jax.random.split(key, 11)

    def glorot(k, shape):
        lim = jnp.sqrt(6.0 / (shape[0] + shape[1]))
        return jax.random.uniform(k, shape, jnp.float32, -lim, lim)

    hc = hid * heads
    p = {}
    # conv1: GATConv(in_ch, hid, heads=heads)
    p["w1"] = glorot(ks[0], (in_ch, hc))
    p["a_src1"] = _block_diag_att(glorot(ks[1], (heads, hid)))
    p["a_dst1"] = _block_diag_att(glorot(ks[2], (heads, hid)))
    p["b1"] = jnp.zeros((1, hc), jnp.float32)
    # norm1: GraphNorm(hid*heads)
    p["g1_w"] = jnp.ones((1, hc), jnp.float32)
    p["g1_b"] = jnp.zeros((1, hc), jnp.float32)
    p["g1_ms"] = jnp.ones((1, hc), jnp.float32)
    # conv2: GATConv(hid*heads, hid, heads=1)
    p["w2"] = glorot(ks[3], (hc, hid))
    p["a_src2"] = glorot(ks[4], (1, hid))
    p["a_dst2"] = glorot(ks[5], (1, hid))
    p["b2"] = jnp.zeros((1, hid), jnp.float32)
    # norm2: GraphNorm(hid)
    p["g2_w"] = jnp.ones((1, hid), jnp.float32)
    p["g2_b"] = jnp.zeros((1, hid), jnp.float32)
    p["g2_ms"] = jnp.ones((1, hid), jnp.float32)
    # conv3: GATConv(hid, out_ch, heads=1)
    p["w3"] = glorot(ks[6], (hid, out_ch))
    p["a_src3"] = glorot(ks[7], (1, out_ch))
    p["a_dst3"] = glorot(ks[8], (1, out_ch))
    p["b3"] = jnp.zeros((1, out_ch), jnp.float32)
    # res_fc: Linear(in_ch, out_ch)
    p["res_w"] = glorot(ks[9], (in_ch, out_ch))
    lim = 1.0 / jnp.sqrt(jnp.float32(in_ch))
    p["res_b"] = jax.random.uniform(ks[10], (1, out_ch), jnp.float32, -lim, lim)
    return p


def _pad8(n):
    return -(-n // 8) * 8


def pack_params(p):
    """Pack every parameter into one [P, 128] f32 slab, each entry 8-row aligned."""
    # conv1 projection and res_fc weights share the same input x -> fuse on lanes.
    w1res = jnp.concatenate([p["w1"], p["res_w"]], axis=1)      # [in_ch, hc+out_ch]
    entries = [
        ("w1res", w1res),
        ("a1", jnp.concatenate([p["a_src1"], p["a_dst1"]], axis=0)),
        ("b1", p["b1"]), ("g1_w", p["g1_w"]), ("g1_b", p["g1_b"]), ("g1_ms", p["g1_ms"]),
        ("w2", p["w2"]),
        ("a2", jnp.concatenate([p["a_src2"], p["a_dst2"]], axis=0)),
        ("b2", p["b2"]), ("g2_w", p["g2_w"]), ("g2_b", p["g2_b"]), ("g2_ms", p["g2_ms"]),
        ("w3", p["w3"]),
        ("a3", jnp.concatenate([p["a_src3"], p["a_dst3"]], axis=0)),
        ("b3", p["b3"]), ("res_b", p["res_b"]),
    ]
    offsets = {}
    rows = []
    r = 0
    for name, arr in entries:
        nr, nc = arr.shape
        offsets[name] = (r, nr, nc)
        nr_pad = _pad8(nr)                                # 8-row (sublane) aligned entries
        rows.append(jnp.pad(arr.astype(jnp.float32),
                            ((0, nr_pad - nr), (0, LANE - nc))))
        r += nr_pad
    slab = jnp.concatenate(rows, axis=0)
    return slab, offsets, r


def _dense_adj(edge_index, n):
    adj = jnp.zeros((n, n), jnp.float32)
    adj = adj.at[edge_index[1], edge_index[0]].set(1.0)          # adj[dst, src] = 1
    adj = adj.at[jnp.arange(n), jnp.arange(n)].set(1.0)          # add_self_loops=True
    return adj


def _cost_estimate(n, in_ch, hid, out_ch, heads, slab_rows):
    hc = hid * heads
    flops = 2 * n * in_ch * (hc + out_ch)                             # fused proj + res
    flops += 2 * (2 * heads) * hc * n + 2 * heads * n * n * hid       # layer 1 attn
    flops += 2 * n * hc * hid + 2 * 2 * hid * n + 2 * n * n * hid     # layer 2
    flops += 2 * n * hid * out_ch + 2 * 2 * out_ch * n + 2 * n * n * out_ch  # layer 3
    trans = (heads + 2) * n * n + n * (hc + hid) + (heads + 2) * n    # exp + elu + recip
    bytes_accessed = 2 * n * n + 4 * slab_rows * LANE + 4 * n * LANE  # bf16 adj, f32 rest
    return pl.CostEstimate(flops=flops, transcendentals=trans,
                           bytes_accessed=bytes_accessed)


def improved_gnn_forward(x, edge_index, params, *, heads, hid, out_ch):
    n, in_ch = x.shape
    adj = _dense_adj(edge_index, n).astype(jnp.bfloat16)          # 0/1 exact in bf16

    slab, offsets, nrows = pack_params(params)
    # fold lane-padded x into the slab -> kernel takes 2 VMEM inputs, not 3.
    x_rows = jnp.pad(x.astype(jnp.float32),
                     ((0, _pad8(n) - n), (0, LANE - in_ch)))
    offsets = dict(offsets, x=(nrows, n, in_ch))
    slab = jnp.concatenate([slab, x_rows], axis=0)

    kernel = functools.partial(improved_gnn_kernel, offsets=offsets,
                               heads=heads, hid=hid, out_ch=out_ch)
    vmem = pltpu.MemorySpace.VMEM
    out = pl.pallas_call(
        kernel,
        out_shape=jax.ShapeDtypeStruct((n, LANE), jnp.float32),
        in_specs=[pl.BlockSpec(memory_space=vmem)] * 2,
        out_specs=pl.BlockSpec(memory_space=vmem),
        cost_estimate=_cost_estimate(n, in_ch, hid, out_ch, heads, slab.shape[0]),
    )(adj, slab)
    # TODO(synk): for batches of graphs / large N on v7x, add a "parallel" grid
    # axis (per-graph or destination-row tiles) + vmem_limit_bytes; a single tiny
    # graph has no parallel axis to shard.
    return out[:, :out_ch]


# ----------------------------- pure-jnp f32 reference (original style) --------

def improved_gnn_reference(x, adj, p, *, heads, hid, out_ch):
    def gat(xx, w, a_src, a_dst, b, H, C):
        h = xx @ w
        s_src = a_src @ h.T                      # [H, N]
        s_dst = h @ a_dst.T                      # [N, H]
        cols = []
        for hd in range(H):
            e = _leaky_relu(s_dst[:, hd:hd + 1] + s_src[hd:hd + 1, :])
            e = jnp.where(adj > 0, e, -1e30)
            e = e - jnp.max(e, axis=-1, keepdims=True)
            pe = jnp.where(adj > 0, jnp.exp(e), 0.0)
            attn = pe / jnp.sum(pe, axis=-1, keepdims=True)
            cols.append(attn @ h[:, hd * C:(hd + 1) * C])
        out = cols[0] if H == 1 else jnp.concatenate(cols, axis=1)
        return out + b

    res = x @ p["res_w"] + p["res_b"]
    h = gat(x, p["w1"], p["a_src1"], p["a_dst1"], p["b1"], heads, hid)
    h = _elu(_graph_norm(h, p["g1_w"], p["g1_b"], p["g1_ms"]))
    h = gat(h, p["w2"], p["a_src2"], p["a_dst2"], p["b2"], 1, hid)
    h = _elu(_graph_norm(h, p["g2_w"], p["g2_b"], p["g2_ms"]))
    h = gat(h, p["w3"], p["a_src3"], p["a_dst3"], p["b3"], 1, out_ch)
    return h + res


# ----------------------------- main -------------------------------------------

if __name__ == "__main__":
    N, IN_CH, HID, OUT_CH, HEADS = 16, 8, 8, 8, 4

    key = jax.random.PRNGKey(0)
    kx, ke, kp = jax.random.split(key, 3)

    x = jax.random.normal(kx, (N, IN_CH), jnp.float32)

    # deterministic graph: bidirectional ring + a few extra directed edges
    idx = jnp.arange(N)
    ring_src = jnp.concatenate([idx, (idx + 1) % N])
    ring_dst = jnp.concatenate([(idx + 1) % N, idx])
    extra_src = jax.random.randint(ke, (8,), 0, N)
    extra_dst = (extra_src + jax.random.randint(jax.random.fold_in(ke, 1), (8,), 1, N)) % N
    edge_index = jnp.stack([jnp.concatenate([ring_src, extra_src]),
                            jnp.concatenate([ring_dst, extra_dst])]).astype(jnp.int32)

    params = init_params(kp, IN_CH, HID, OUT_CH, HEADS)

    out = improved_gnn_forward(x, edge_index, params,
                               heads=HEADS, hid=HID, out_ch=OUT_CH)
    out = jax.block_until_ready(out)

    ref = improved_gnn_reference(x, _dense_adj(edge_index, N), params,
                                 heads=HEADS, hid=HID, out_ch=OUT_CH)

    assert out.shape == (N, OUT_CH)
    assert bool(jnp.all(jnp.isfinite(out)))
    # Tolerance accounts for bf16 MXU operands (per perf review) vs pure-f32
    # reference; kernel accumulation is still f32.
    assert bool(jnp.allclose(out, ref, rtol=5e-2, atol=5e-2)), \
        "Pallas kernel mismatch vs jnp reference"
    print("KERNEL_OK")
</pallas_src>

<mosaic_0001>
module attributes {stable_mosaic.version = 11 : i64} {
  func.func @improved_gnn_kernel(%arg0: memref<16x16xbf16, #tpu.memory_space<vmem>>, %arg1: memref<168x128xf32, #tpu.memory_space<vmem>>, %arg2: memref<16x128xf32, #tpu.memory_space<vmem>>) attributes {dimension_semantics = [], scalar_prefetch = 0 : i64, scratch_operands = 0 : i64, tpu.core_type = #tpu.core_type<tc>} {
    %c0 = arith.constant 0 : index
    %c0_0 = arith.constant 0 : index
    %0 = vector.load %arg0[%c0, %c0_0] : memref<16x16xbf16, #tpu.memory_space<vmem>>, vector<16x16xbf16>
    %c0_1 = arith.constant 0 : index
    %c0_2 = arith.constant 0 : index
    %1 = vector.load %arg1[%c0_1, %c0_2] : memref<168x128xf32, #tpu.memory_space<vmem>>, vector<168x128xf32>
    %2 = vector.extract_strided_slice %1 {offsets = [152, 0], sizes = [16, 8], strides = [1, 1]} : vector<168x128xf32> to vector<16x8xf32>
    %3 = vector.extract_strided_slice %1 {offsets = [0, 0], sizes = [8, 40], strides = [1, 1]} : vector<168x128xf32> to vector<8x40xf32>
    %4 = arith.truncf %2 : vector<16x8xf32> to vector<16x8xbf16>
    %5 = arith.truncf %3 : vector<8x40xf32> to vector<8x40xbf16>
    %cst = arith.constant dense<0.000000e+00> : vector<16x40xf32>
    %6 = tpu.matmul %4, %5, %cst {dimension_numbers = #tpu.dot_dimension_numbers<[1], [0], [0], [1], [0, 0, 1, 1], [], []>} : vector<16x8xbf16>, vector<8x40xbf16>, vector<16x40xf32> -> vector<16x40xf32>
    %7 = vector.extract_strided_slice %6 {offsets = [0, 32], sizes = [16, 8], strides = [1, 1]} : vector<16x40xf32> to vector<16x8xf32>
    %8 = vector.extract_strided_slice %1 {offsets = [144, 0], sizes = [1, 8], strides = [1, 1]} : vector<168x128xf32> to vector<1x8xf32>
    %9 = vector.broadcast %8 : vector<1x8xf32> to vector<16x8xf32>
    %10 = arith.addf %7, %9 : vector<16x8xf32>
    %11 = vector.extract_strided_slice %6 {offsets = [0, 0], sizes = [16, 32], strides = [1, 1]} : vector<16x40xf32> to vector<16x32xf32>
    %12 = vector.extract_strided_slice %1 {offsets = [8, 0], sizes = [8, 32], strides = [1, 1]} : vector<168x128xf32> to vector<8x32xf32>
    %13 = vector.extract_strided_slice %1 {offsets = [16, 0], sizes = [1, 32], strides = [1, 1]} : vector<168x128xf32> to vector<1x32xf32>
    %14 = arith.truncf %11 : vector<16x32xf32> to vector<16x32xbf16>
    %15 = arith.truncf %12 : vector<8x32xf32> to vector<8x32xbf16>
    %cst_3 = arith.constant dense<0.000000e+00> : vector<8x16xf32>
    %16 = tpu.matmul %15, %14, %cst_3 {dimension_numbers = #tpu.dot_dimension_numbers<[1], [1], [0], [0], [0, 0, 1, 0], [], []>} : vector<8x32xbf16>, vector<16x32xbf16>, vector<8x16xf32> -> vector<8x16xf32>
    %17 = vector.extract_strided_slice %16 {offsets = [0, 0], sizes = [4, 16], strides = [1, 1]} : vector<8x16xf32> to vector<4x16xf32>
    %18 = vector.extract_strided_slice %16 {offsets = [4, 0], sizes = [4, 16], strides = [1, 1]} : vector<8x16xf32> to vector<4x16xf32>
    %19 = vector.shape_cast %18 : vector<4x16xf32> to vector<4x16x1xf32>
    %20 = vector.shape_cast %17 : vector<4x16xf32> to vector<4x1x16xf32>
    %21 = vector.broadcast %19 : vector<4x16x1xf32> to vector<4x16x16xf32>
    %22 = vector.broadcast %20 : vector<4x1x16xf32> to vector<4x16x16xf32>
    %23 = arith.addf %21, %22 : vector<4x16x16xf32>
    %cst_4 = arith.constant 0.000000e+00 : f32
    %24 = vector.broadcast %cst_4 : f32 to vector<4x16x16xf32>
    %25 = arith.cmpf oge, %23, %24 : vector<4x16x16xf32>
    %cst_5 = arith.constant 2.000000e-01 : f32
    %26 = vector.broadcast %cst_5 : f32 to vector<4x16x16xf32>
    %27 = arith.mulf %26, %23 : vector<4x16x16xf32>
    %28 = arith.select %25, %23, %27 : vector<4x16x16xi1>, vector<4x16x16xf32>
    %cst_6 = arith.constant dense<0xFF800000> : vector<4x16xf32>
    %29 = vector.multi_reduction <maximumf>, %28, %cst_6 [2] : vector<4x16x16xf32> to vector<4x16xf32>
    %30 = vector.shape_cast %29 : vector<4x16xf32> to vector<4x16x1xf32>
    %31 = vector.broadcast %30 : vector<4x16x1xf32> to vector<4x16x16xf32>
    %32 = arith.subf %28, %31 : vector<4x16x16xf32>
    %33 = math.exp %32 : vector<4x16x16xf32>
    %34 = vector.shape_cast %0 : vector<16x16xbf16> to vector<1x16x16xbf16>
    %35 = arith.extf %34 : vector<1x16x16xbf16> to vector<1x16x16xf32>
    %36 = vector.broadcast %35 : vector<1x16x16xf32> to vector<4x16x16xf32>
    %37 = arith.mulf %33, %36 : vector<4x16x16xf32>
    %cst_7 = arith.constant dense<0.000000e+00> : vector<4x16xf32>
    %38 = vector.multi_reduction <add>, %37, %cst_7 [2] : vector<4x16x16xf32> to vector<4x16xf32>
    %39 = vector.shape_cast %38 : vector<4x16xf32> to vector<4x16x1xf32>
    %40 = tpu.reciprocal %39 {approx = true} : vector<4x16x1xf32> -> vector<4x16x1xf32>
    %41 = vector.broadcast %40 : vector<4x16x1xf32> to vector<4x16x16xf32>
    %42 = arith.mulf %37, %41 : vector<4x16x16xf32>
    %43 = arith.truncf %42 : vector<4x16x16xf32> to vector<4x16x16xbf16>
    %44 = vector.extract_strided_slice %14 {offsets = [0, 0], sizes = [16, 8], strides = [1, 1]} : vector<16x32xbf16> to vector<16x8xbf16>
    %45 = vector.extract_strided_slice %14 {offsets = [0, 8], sizes = [16, 8], strides = [1, 1]} : vector<16x32xbf16> to vector<16x8xbf16>
    %46 = vector.extract_strided_slice %14 {offsets = [0, 16], sizes = [16, 8], strides = [1, 1]} : vector<16x32xbf16> to vector<16x8xbf16>
    %47 = vector.extract_strided_slice %14 {offsets = [0, 24], sizes = [16, 8], strides = [1, 1]} : vector<16x32xbf16> to vector<16x8xbf16>
    %48 = vector.shape_cast %44 : vector<16x8xbf16> to vector<1x16x8xbf16>
    %49 = vector.shape_cast %45 : vector<16x8xbf16> to vector<1x16x8xbf16>
    %50 = vector.shape_cast %46 : vector<16x8xbf16> to vector<1x16x8xbf16>
    %51 = vector.shape_cast %47 : vector<16x8xbf16> to vector<1x16x8xbf16>
    %52 = tpu.concatenate %48, %49, %50, %51 in 0 : vector<1x16x8xbf16>, vector<1x16x8xbf16>, vector<1x16x8xbf16>, vector<1x16x8xbf16> -> vector<4x16x8xbf16>
    "tpu.trace_start"() <{level = 10 : i32, message = "hij,hjc->hic"}> : () -> ()
    %cst_8 = arith.constant dense<0.000000e+00> : vector<4x16x8xf32>
    %53 = tpu.matmul %43, %52, %cst_8 {dimension_numbers = #tpu.dot_dimension_numbers<[2], [1], [1], [2], [0, 0, 0, 1, 1, 2], [0], [0]>} : vector<4x16x16xbf16>, vector<4x16x8xbf16>, vector<4x16x8xf32> -> vector<4x16x8xf32>
    "tpu.trace_stop"() : () -> ()
    %54 = vector.extract_strided_slice %53 {offsets = [0, 0, 0], sizes = [1, 16, 8], strides = [1, 1, 1]} : vector<4x16x8xf32> to vector<1x16x8xf32>
    %55 = vector.shape_cast %54 : vector<1x16x8xf32> to vector<16x8xf32>
    %56 = vector.extract_strided_slice %53 {offsets = [1, 0, 0], sizes = [1, 16, 8], strides = [1, 1, 1]} : vector<4x16x8xf32> to vector<1x16x8xf32>
    %57 = vector.shape_cast %56 : vector<1x16x8xf32> to vector<16x8xf32>
    %58 = vector.extract_strided_slice %53 {offsets = [2, 0, 0], sizes = [1, 16, 8], strides = [1, 1, 1]} : vector<4x16x8xf32> to vector<1x16x8xf32>
    %59 = vector.shape_cast %58 : vector<1x16x8xf32> to vector<16x8xf32>
    %60 = vector.extract_strided_slice %53 {offsets = [3, 0, 0], sizes = [1, 16, 8], strides = [1, 1, 1]} : vector<4x16x8xf32> to vector<1x16x8xf32>
    %61 = vector.shape_cast %60 : vector<1x16x8xf32> to vector<16x8xf32>
    %62 = tpu.concatenate %55, %57, %59, %61 in 1 : vector<16x8xf32>, vector<16x8xf32>, vector<16x8xf32>, vector<16x8xf32> -> vector<16x32xf32>
    %63 = vector.broadcast %13 : vector<1x32xf32> to vector<16x32xf32>
    %64 = arith.addf %62, %63 : vector<16x32xf32>
    %65 = vector.extract_strided_slice %1 {offsets = [24, 0], sizes = [1, 32], strides = [1, 1]} : vector<168x128xf32> to vector<1x32xf32>
    %66 = vector.extract_strided_slice %1 {offsets = [32, 0], sizes = [1, 32], strides = [1, 1]} : vector<168x128xf32> to vector<1x32xf32>
    %67 = vector.extract_strided_slice %1 {offsets = [40, 0], sizes = [1, 32], strides = [1, 1]} : vector<168x128xf32> to vector<1x32xf32>
    %cst_9 = arith.constant dense<0.000000e+00> : vector<32xf32>
    %68 = vector.multi_reduction <add>, %64, %cst_9 [0] : vector<16x32xf32> to vector<32xf32>
    %69 = vector.shape_cast %68 : vector<32xf32> to vector<1x32xf32>
    %cst_10 = arith.constant 1.600000e+01 : f32
    %70 = vector.broadcast %cst_10 : f32 to vector<1x32xf32>
    %71 = arith.divf %69, %70 : vector<1x32xf32>
    %72 = arith.mulf %71, %67 : vector<1x32xf32>
    %73 = vector.broadcast %72 : vector<1x32xf32> to vector<16x32xf32>
    %74 = arith.subf %64, %73 : vector<16x32xf32>
    %75 = arith.mulf %74, %74 : vector<16x32xf32>
    %cst_11 = arith.constant dense<0.000000e+00> : vector<32xf32>
    %76 = vector.multi_reduction <add>, %75, %cst_11 [0] : vector<16x32xf32> to vector<32xf32>
    %77 = vector.shape_cast %76 : vector<32xf32> to vector<1x32xf32>
    %cst_12 = arith.constant 1.600000e+01 : f32
    %78 = vector.broadcast %cst_12 : f32 to vector<1x32xf32>
    %79 = arith.divf %77, %78 : vector<1x32xf32>
    %80 = vector.broadcast %65 : vector<1x32xf32> to vector<16x32xf32>
    %81 = arith.mulf %80, %74 : vector<16x32xf32>
    %cst_13 = arith.constant 9.99999974E-6 : f32
    %82 = vector.broadcast %cst_13 : f32 to vector<1x32xf32>
    %83 = arith.addf %79, %82 : vector<1x32xf32>
    %84 = math.rsqrt %83 : vector<1x32xf32>
    %85 = vector.broadcast %84 : vector<1x32xf32> to vector<16x32xf32>
    %86 = arith.mulf %81, %85 : vector<16x32xf32>
    %87 = vector.broadcast %66 : vector<1x32xf32> to vector<16x32xf32>
    %88 = arith.addf %86, %87 : vector<16x32xf32>
    %cst_14 = arith.constant 0.000000e+00 : f32
    %89 = vector.broadcast %cst_14 : f32 to vector<16x32xf32>
    %90 = arith.cmpf ogt, %88, %89 : vector<16x32xf32>
    %cst_15 = arith.constant 0.000000e+00 : f32
    %91 = vector.broadcast %cst_15 : f32 to vector<16x32xf32>
    %92 = arith.minimumf %88, %91 : vector<16x32xf32>
    %93 = math.exp %92 : vector<16x32xf32>
    %cst_16 = arith.constant 1.000000e+00 : f32
    %94 = vector.broadcast %cst_16 : f32 to vector<16x32xf32>
    %95 = arith.subf %93, %94 : vector<16x32xf32>
    %96 = arith.select %90, %88, %95 : vector<16x32xi1>, vector<16x32xf32>
    %97 = vector.extract_strided_slice %1 {offsets = [48, 0], sizes = [32, 8], strides = [1, 1]} : vector<168x128xf32> to vector<32x8xf32>
    %98 = vector.extract_strided_slice %1 {offsets = [80, 0], sizes = [2, 8], strides = [1, 1]} : vector<168x128xf32> to vector<2x8xf32>
    %99 = vector.extract_strided_slice %1 {offsets = [88, 0], sizes = [1, 8], strides = [1, 1]} : vector<168x128xf32> to vector<1x8xf32>
    %100 = arith.truncf %96 : vector<16x32xf32> to vector<16x32xbf16>
    %101 = arith.truncf %97 : vector<32x8xf32> to vector<32x8xbf16>
    %cst_17 = arith.constant dense<0.000000e+00> : vector<16x8xf32>
    %102 = tpu.matmul %100, %101, %cst_17 {dimension_numbers = #tpu.dot_dimension_numbers<[1], [0], [0], [1], [0, 0, 1, 1], [], []>} : vector<16x32xbf16>, vector<32x8xbf16>, vector<16x8xf32> -> vector<16x8xf32>
    %103 = arith.truncf %102 : vector<16x8xf32> to vector<16x8xbf16>
    %104 = arith.truncf %98 : vector<2x8xf32> to vector<2x8xbf16>
    %cst_18 = arith.constant dense<0.000000e+00> : vector<2x16xf32>
    %105 = tpu.matmul %104, %103, %cst_18 {dimension_numbers = #tpu.dot_dimension_numbers<[1], [1], [0], [0], [0, 0, 1, 0], [], []>} : vector<2x8xbf16>, vector<16x8xbf16>, vector<2x16xf32> -> vector<2x16xf32>
    %106 = vector.extract_strided_slice %105 {offsets = [0, 0], sizes = [1, 16], strides = [1, 1]} : vector<2x16xf32> to vector<1x16xf32>
    %107 = vector.extract_strided_slice %105 {offsets = [1, 0], sizes = [1, 16], strides = [1, 1]} : vector<2x16xf32> to vector<1x16xf32>
    %108 = vector.shape_cast %107 : vector<1x16xf32> to vector<1x16x1xf32>
    %109 = vector.shape_cast %106 : vector<1x16xf32> to vector<1x1x16xf32>
    %110 = vector.broadcast %108 : vector<1x16x1xf32> to vector<1x16x16xf32>
    %111 = vector.broadcast %109 : vector<1x1x16xf32> to vector<1x16x16xf32>
    %112 = arith.addf %110, %111 : vector<1x16x16xf32>
    %cst_19 = arith.constant 0.000000e+00 : f32
    %113 = vector.broadcast %cst_19 : f32 to vector<1x16x16xf32>
    %114 = arith.cmpf oge, %112, %113 : vector<1x16x16xf32>
    %cst_20 = arith.constant 2.000000e-01 : f32
    %115 = vector.broadcast %cst_20 : f32 to vector<1x16x16xf32>
    %116 = arith.mulf %115, %112 : vector<1x16x16xf32>
    %117 = arith.select %114, %112, %116 : vector<1x16x16xi1>, vector<1x16x16xf32>
    %cst_21 = arith.constant dense<0xFF800000> : vector<1x16xf32>
    %118 = vector.multi_reduction <maximumf>, %117, %cst_21 [2] : vector<1x16x16xf32> to vector<1x16xf32>
    %119 = vector.shape_cast %118 : vector<1x16xf32> to vector<1x16x1xf32>
    %120 = vector.broadcast %119 : vector<1x16x1xf32> to vector<1x16x16xf32>
    %121 = arith.subf %117, %120 : vector<1x16x16xf32>
    %122 = math.exp %121 : vector<1x16x16xf32>
    %123 = vector.shape_cast %0 : vector<16x16xbf16> to vector<1x16x16xbf16>
    %124 = arith.extf %123 : vector<1x16x16xbf16> to vector<1x16x16xf32>
    %125 = arith.mulf %122, %124 : vector<1x16x16xf32>
    %cst_22 = arith.constant dense<0.000000e+00> : vector<1x16xf32>
    %126 = vector.multi_reduction <add>, %125, %cst_22 [2] : vector<1x16x16xf32> to vector<1x16xf32>
    %127 = vector.shape_cast %126 : vector<1x16xf32> to vector<1x16x1xf32>
    %128 = tpu.reciprocal %127 {approx = true} : vector<1x16x1xf32> -> vector<1x16x1xf32>
    %129 = vector.broadcast %128 : vector<1x16x1xf32> to vector<1x16x16xf32>
    %130 = arith.mulf %125, %129 : vector<1x16x16xf32>
    %131 = arith.truncf %130 : vector<1x16x16xf32> to vector<1x16x16xbf16>
    %132 = vector.shape_cast %131 : vector<1x16x16xbf16> to vector<16x16xbf16>
    %cst_23 = arith.constant dense<0.000000e+00> : vector<16x8xf32>
    %133 = tpu.matmul %132, %103, %cst_23 {dimension_numbers = #tpu.dot_dimension_numbers<[1], [0], [0], [1], [0, 0, 1, 1], [], []>} : vector<16x16xbf16>, vector<16x8xbf16>, vector<16x8xf32> -> vector<16x8xf32>
    %134 = vector.broadcast %99 : vector<1x8xf32> to vector<16x8xf32>
    %135 = arith.addf %133, %134 : vector<16x8xf32>
    %136 = vector.extract_strided_slice %1 {offsets = [96, 0], sizes = [1, 8], strides = [1, 1]} : vector<168x128xf32> to vector<1x8xf32>
    %137 = vector.extract_strided_slice %1 {offsets = [104, 0], sizes = [1, 8], strides = [1, 1]} : vector<168x128xf32> to vector<1x8xf32>
    %138 = vector.extract_strided_slice %1 {offsets = [112, 0], sizes = [1, 8], strides = [1, 1]} : vector<168x128xf32> to vector<1x8xf32>
    %cst_24 = arith.constant dense<0.000000e+00> : vector<8xf32>
    %139 = vector.multi_reduction <add>, %135, %cst_24 [0] : vector<16x8xf32> to vector<8xf32>
    %140 = vector.shape_cast %139 : vector<8xf32> to vector<1x8xf32>
    %cst_25 = arith.constant 1.600000e+01 : f32
    %141 = vector.broadcast %cst_25 : f32 to vector<1x8xf32>
    %142 = arith.divf %140, %141 : vector<1x8xf32>
    %143 = arith.mulf %142, %138 : vector<1x8xf32>
    %144 = vector.broadcast %143 : vector<1x8xf32> to vector<16x8xf32>
    %145 = arith.subf %135, %144 : vector<16x8xf32>
    %146 = arith.mulf %145, %145 : vector<16x8xf32>
    %cst_26 = arith.constant dense<0.000000e+00> : vector<8xf32>
    %147 = vector.multi_reduction <add>, %146, %cst_26 [0] : vector<16x8xf32> to vector<8xf32>
    %148 = vector.shape_cast %147 : vector<8xf32> to vector<1x8xf32>
    %cst_27 = arith.constant 1.600000e+01 : f32
    %149 = vector.broadcast %cst_27 : f32 to vector<1x8xf32>
    %150 = arith.divf %148, %149 : vector<1x8xf32>
    %151 = vector.broadcast %136 : vector<1x8xf32> to vector<16x8xf32>
    %152 = arith.mulf %151, %145 : vector<16x8xf32>
    %cst_28 = arith.constant 9.99999974E-6 : f32
    %153 = vector.broadcast %cst_28 : f32 to vector<1x8xf32>
    %154 = arith.addf %150, %153 : vector<1x8xf32>
    %155 = math.rsqrt %154 : vector<1x8xf32>
    %156 = vector.broadcast %155 : vector<1x8xf32> to vector<16x8xf32>
    %157 = arith.mulf %152, %156 : vector<16x8xf32>
    %158 = vector.broadcast %137 : vector<1x8xf32> to vector<16x8xf32>
    %159 = arith.addf %157, %158 : vector<16x8xf32>
    %cst_29 = arith.constant 0.000000e+00 : f32
    %160 = vector.broadcast %cst_29 : f32 to vector<16x8xf32>
    %161 = arith.cmpf ogt, %159, %160 : vector<16x8xf32>
    %cst_30 = arith.constant 0.000000e+00 : f32
    %162 = vector.broadcast %cst_30 : f32 to vector<16x8xf32>
    %163 = arith.minimumf %159, %162 : vector<16x8xf32>
    %164 = math.exp %163 : vector<16x8xf32>
    %cst_31 = arith.constant 1.000000e+00 : f32
    %165 = vector.broadcast %cst_31 : f32 to vector<16x8xf32>
    %166 = arith.subf %164, %165 : vector<16x8xf32>
    %167 = arith.select %161, %159, %166 : vector<16x8xi1>, vector<16x8xf32>
    %168 = vector.extract_strided_slice %1 {offsets = [120, 0], sizes = [8, 8], strides = [1, 1]} : vector<168x128xf32> to vector<8x8xf32>
    %169 = vector.extract_strided_slice %1 {offsets = [128, 0], sizes = [2, 8], strides = [1, 1]} : vector<168x128xf32> to vector<2x8xf32>
    %170 = vector.extract_strided_slice %1 {offsets = [136, 0], sizes = [1, 8], strides = [1, 1]} : vector<168x128xf32> to vector<1x8xf32>
    %171 = arith.truncf %167 : vector<16x8xf32> to vector<16x8xbf16>
    %172 = arith.truncf %168 : vector<8x8xf32> to vector<8x8xbf16>
    %cst_32 = arith.constant dense<0.000000e+00> : vector<16x8xf32>
    %173 = tpu.matmul %171, %172, %cst_32 {dimension_numbers = #tpu.dot_dimension_numbers<[1], [0], [0], [1], [0, 0, 1, 1], [], []>} : vector<16x8xbf16>, vector<8x8xbf16>, vector<16x8xf32> -> vector<16x8xf32>
    %174 = arith.truncf %173 : vector<16x8xf32> to vector<16x8xbf16>
    %175 = arith.truncf %169 : vector<2x8xf32> to vector<2x8xbf16>
    %cst_33 = arith.constant dense<0.000000e+00> : vector<2x16xf32>
    %176 = tpu.matmul %175, %174, %cst_33 {dimension_numbers = #tpu.dot_dimension_numbers<[1], [1], [0], [0], [0, 0, 1, 0], [], []>} : vector<2x8xbf16>, vector<16x8xbf16>, vector<2x16xf32> -> vector<2x16xf32>
    %177 = vector.extract_strided_slice %176 {offsets = [0, 0], sizes = [1, 16], strides = [1, 1]} : vector<2x16xf32> to vector<1x16xf32>
    %178 = vector.extract_strided_slice %176 {offsets = [1, 0], sizes = [1, 16], strides = [1, 1]} : vector<2x16xf32> to vector<1x16xf32>
    %179 = vector.shape_cast %178 : vector<1x16xf32> to vector<1x16x1xf32>
    %180 = vector.shape_cast %177 : vector<1x16xf32> to vector<1x1x16xf32>
    %181 = vector.broadcast %179 : vector<1x16x1xf32> to vector<1x16x16xf32>
    %182 = vector.broadcast %180 : vector<1x1x16xf32> to vector<1x16x16xf32>
    %183 = arith.addf %181, %182 : vector<1x16x16xf32>
    %cst_34 = arith.constant 0.000000e+00 : f32
    %184 = vector.broadcast %cst_34 : f32 to vector<1x16x16xf32>
    %185 = arith.cmpf oge, %183, %184 : vector<1x16x16xf32>
    %cst_35 = arith.constant 2.000000e-01 : f32
    %186 = vector.broadcast %cst_35 : f32 to vector<1x16x16xf32>
    %187 = arith.mulf %186, %183 : vector<1x16x16xf32>
    %188 = arith.select %185, %183, %187 : vector<1x16x16xi1>, vector<1x16x16xf32>
    %cst_36 = arith.constant dense<0xFF800000> : vector<1x16xf32>
    %189 = vector.multi_reduction <maximumf>, %188, %cst_36 [2] : vector<1x16x16xf32> to vector<1x16xf32>
    %190 = vector.shape_cast %189 : vector<1x16xf32> to vector<1x16x1xf32>
    %191 = vector.broadcast %190 : vector<1x16x1xf32> to vector<1x16x16xf32>
    %192 = arith.subf %188, %191 : vector<1x16x16xf32>
    %193 = math.exp %192 : vector<1x16x16xf32>
    %194 = vector.shape_cast %0 : vector<16x16xbf16> to vector<1x16x16xbf16>
    %195 = arith.extf %194 : vector<1x16x16xbf16> to vector<1x16x16xf32>
    %196 = arith.mulf %193, %195 : vector<1x16x16xf32>
    %cst_37 = arith.constant dense<0.000000e+00> : vector<1x16xf32>
    %197 = vector.multi_reduction <add>, %196, %cst_37 [2] : vector<1x16x16xf32> to vector<1x16xf32>
    %198 = vector.shape_cast %197 : vector<1x16xf32> to vector<1x16x1xf32>
    %199 = tpu.reciprocal %198 {approx = true} : vector<1x16x1xf32> -> vector<1x16x1xf32>
    %200 = vector.broadcast %199 : vector<1x16x1xf32> to vector<1x16x16xf32>
    %201 = arith.mulf %196, %200 : vector<1x16x16xf32>
    %202 = arith.truncf %201 : vector<1x16x16xf32> to vector<1x16x16xbf16>
    %203 = vector.shape_cast %202 : vector<1x16x16xbf16> to vector<16x16xbf16>
    %cst_38 = arith.constant dense<0.000000e+00> : vector<16x8xf32>
    %204 = tpu.matmul %203, %174, %cst_38 {dimension_numbers = #tpu.dot_dimension_numbers<[1], [0], [0], [1], [0, 0, 1, 1], [], []>} : vector<16x16xbf16>, vector<16x8xbf16>, vector<16x8xf32> -> vector<16x8xf32>
    %205 = vector.broadcast %170 : vector<1x8xf32> to vector<16x8xf32>
    %206 = arith.addf %204, %205 : vector<16x8xf32>
    %207 = arith.addf %206, %10 : vector<16x8xf32>
    %cst_39 = arith.constant 0.000000e+00 : f32
    %208 = vector.broadcast %cst_39 : f32 to vector<16x120xf32>
    %209 = tpu.concatenate %207, %208 in 1 : vector<16x8xf32>, vector<16x120xf32> -> vector<16x128xf32>
    %c0_40 = arith.constant 0 : index
    %c0_41 = arith.constant 0 : index
    %210 = vector.load %arg2[%c0_40, %c0_41] : memref<16x128xf32, #tpu.memory_space<vmem>>, vector<16x128xf32>
    tpu.vector_store %arg2[%c0_40, %c0_41], %209 {strides = array<i32>} : memref<16x128xf32, #tpu.memory_space<vmem>>, vector<16x128xf32>,
    return
  }
}

</mosaic_0001>

<bundles_post_ra>
// kernel: tpu_custom_call.1
= control target key start
LH: loop header
LB: loop body
LE: loop exit
PB: predicated region body
PF: predicated region fallthrough
CT: control target
= control target key end

     0   :  { %7 = vsyncpa [#allocation3], 0  ;;  %s1650_s0 = inlined_call_operand.hbm [shape: bf16[16,16], index: 0, kind: input, shape index: {}]   ;;  %s1651_s1 = inlined_call_operand.hbm [shape: f32[168,128], index: 1, kind: input, shape index: {}]   ;;  %s1652_s2 = inlined_call_operand.hbm [shape: f32[16,128], index: 2, kind: output, shape index: {}]  }
   0x1   :  { %8 = vsyncpa [#allocation6], 0 }
   0x2   :  { %9 = vsyncpa [#allocation4], 0  ;;  %s1420_s9 = smov [#allocation2]   ;;  %s1348_s13 = scalar_lea.hbm %s1650_s0, 128 }
   0x3   :  { %s15_s10 = sshll.u32 %s1420_s9, 4  ;;  %p1349_p0 = scmp.ne.s32.totalorder %s1650_s0, %s1348_s13  ;;  %s16_s10 = int_to_ptr.vmem [resolvable:$true] %s15_s10 }
   0x4   :  { %p1352_p1 = scmp.lt.u32.totalorder %s1348_s13, %s1650_s0 }
   0x6   :  { %p1354_p2 = pnand %p1352_p1, %p1349_p0 }
   0x8   :  { %1357 = shalt.err (!%p1354_p2)
}
   0x9   :  { %s1358_s18 = scalar_lea.vmem %s16_s10, 128  ;;  %p1363_p4 = scmp.lt.s32.totalorder %s16_s10, %s16_s10 }
   0xa   :  { %p1359_p3 = scmp.ne.s32.totalorder %s16_s10, %s1358_s18  ;;  %p1364_p5 = scmp.lt.s32.totalorder %s1358_s18, %s1358_s18 }
   0xc   :  { %p1365_p6 = por %p1364_p5, %p1363_p4 }
   0xe   :  { %p1366_p7 = pnand %p1365_p6, %p1359_p3 }
  0x10   :  { %1369 = shalt.err (!%p1366_p7)
}
  0x11   :  { %s1421_s19 = smov 64   ;;  %s1422_s20 = smov 4  }
  0x12   :  { %21 = dma.hbm_to_vmem [thread:$0]  %s1650_s0, 128, %s16_s10, [#allocation3], %s1421_s19, %s1421_s19, %s1422_s20  }
  0x13   :  { %s1423_s23 = smov [#allocation5]   ;;  %s1370_s27 = scalar_lea.hbm %s1651_s1, 2688 }
  0x14   :  { %s27_s24 = sshll.u32 %s1423_s23, 4  ;;  %p1371_p8 = scmp.ne.s32.totalorder %s1651_s1, %s1370_s27  ;;  %s28_s24 = int_to_ptr.vmem [resolvable:$true] %s27_s24 }
  0x15   :  { %p1374_p9 = scmp.lt.u32.totalorder %s1370_s27, %s1651_s1 }
  0x17   :  { %p1376_p10 = pnand %p1374_p9, %p1371_p8 }
  0x19   :  { %1379 = shalt.err (!%p1376_p10)
}
  0x1a   :  { %s1380_s4 = scalar_lea.vmem %s28_s24, 2688  ;;  %p1385_p12 = scmp.lt.s32.totalorder %s28_s24, %s28_s24 }
  0x1b   :  { %p1381_p11 = scmp.ne.s32.totalorder %s28_s24, %s1380_s4  ;;  %p1386_p13 = scmp.lt.s32.totalorder %s1380_s4, %s1380_s4 }
  0x1d   :  { %p1387_p0 = por %p1386_p13, %p1385_p12 }
  0x1f   :  { %p1388_p1 = pnand %p1387_p0, %p1381_p11 }
  0x21   :  { %1391 = shalt.err (!%p1388_p1)
}
  0x22   :  { %s1424_s0 = smov 128   ;;  %s1425_s5 = smov 8  }
  0x23   :  { %33 = dma.hbm_to_vmem [thread:$0]  %s1651_s1, 2688, %s28_s24, [#allocation6], %s1424_s0, %s1424_s0, %s1425_s5  }
  0x24   :  { %1414 = dma.done.wait [#allocation3], 128  }
  0x25   :  { %1415 = vsyncadd [#allocation3], 4294967168 }
  0x26   :  { %1416 = dma.done.wait [#allocation6], 2688  }
  0x27   :  { %1417 = vsyncadd [#allocation6], 4294964608  ;;  %v1426_v0 = vmov 0.0   ;;  %vm1427_vm0 = vmmov 0   ;;  %v43_v1 = vld [vmem:[#allocation5] sm:$0xff]  ;;  %vm70_vm1 = vcmask 1043456   ;;  %v115_v15 = vlaneseq }
  0x28   :  { %1197 = vmatprep.subr.bf16.mxu0 %v1426_v0  ;;  %1199 = vmatprep.mubr.msk.bf16.mxu0 %vm1427_vm0, %v1426_v0  ;;  %v62_v2 = vld [vmem:[#allocation5 + $0x98] sm:$0xff]  ;;  %v65_v3 = vpack.c.bf16 %v43_v1, %v43_v1  ;;  %v63_v4 = vld [vmem:[#allocation5 + $0xa0] sm:$0xff]  ;;  %vm66_vm2 = vcmask 64512   ;;  %vm127_vm3 = vcmask 261120   ;;  %v44_v13 = vld [vmem:[#allocation5 + $0x8] sm:$0xff]  ;;  %vm295_vm5 = vcmask 130048  }
  0x29   :  { %1203 = vmatprep.subr.bf16.mxu1 %v1426_v0  ;;  %1205 = vmatprep.mubr.msk.bf16.mxu1 %vm1427_vm0, %v1426_v0  ;;  %v64_v6 = vpack.c.bf16 %v63_v4, %v62_v2  ;;  %v126_v14 = vpack.c.bf16 %v44_v13, %v44_v13  ;;  %v1506_v16 = vshrl.u32 %v115_v15, 7  ;;  %v1428_v29 = vmov 1966171168   ;;  %s1429_s1 = smov 120   ;;  %s1430_s8 = smov 104  }
  0x2a   :  { %v72_v5 = vsel %vm70_vm1, %v65_v3, 0  ;;  %v220_v30 = vunpack.c.l.s4 %v1428_v29  ;;  %s1431_s9 = smov 112   ;;  %s1432_s10 = smov 16   ;;  %vm612_vm13 = vcmask 195584  }
  0x2b   :  { %1198 = vmatpush3.bf16.msra.mxu0 %v72_v5  ;;  %v187_v17 = vsub.s32 5, %v1506_v16  ;;  %v176_v18 = vsub.s32 4, %v1506_v16  ;;  %v198_v25 = vsub.s32 6, %v1506_v16  ;;  %v209_v27 = vsub.s32 7, %v1506_v16  ;;  %s1433_s11 = smov 24   ;;  %s1434_s12 = smov 32  }
  0x2c   :  { %1209 = vmatprep.subr.bf16.mxu0 %v1426_v0  ;;  %v221_v31 = vunpack.c.0.s8 %v220_v30  ;;  %v1514_v35 = vsub.s32 0, %v1506_v16  ;;  %s1435_s13 = smov 96   ;;  %s1436_s14 = smov [#allocation7]  }
  0x2d   :  { %s1139_s15 = sshll.u32 %s1436_s14, 4  ;;  %s1140_s15 = int_to_ptr.vmem [resolvable:$true] %s1139_s15 }
  0x2e   :  { %1200 = vmatmul.mubr.msk.bf16.vlgmr.msra.gmra.mrb[0].mxu0 %vm66_vm2, %v64_v6  ;;  %v224_v32 = vsub.s32 %v221_v31, %v1506_v16  ;;  %s1392_s16 = scalar_lea.vmem %s1140_s15, 256  ;;  %p1397_p3 = scmp.lt.s32.totalorder %s1140_s15, %s1140_s15 }
  0x2f   :  { %1211 = vmatprep.mubr.msk.bf16.mxu0 %vm1427_vm0, %v1426_v0  ;;  %p1393_p2 = scmp.ne.s32.totalorder %s1140_s15, %s1392_s16  ;;  %p1398_p4 = scmp.lt.s32.totalorder %s1392_s16, %s1392_s16 }
  0x31   :  { %p1399_p5 = por %p1398_p4, %p1397_p3 }
  0x33   :  { %p1400_p6 = pnand %p1399_p5, %p1393_p2 }
 0x101   :  { %v1490_v7 = vpop.f32.mrb[0].mxu0 }
 0x102   :  { %v1201_v8 = vpop.f32.mrb[1].mxu0 }
 0x103   :  { %v1492_v9 = vpop.f32.mrb[2].mxu0 }
 0x104   :  { %v1496_v10 = vpack.c.bf16 %v1492_v9, %v1490_v7  ;;  %v1202_v11 = vpop.f32.mrb[3].mxu0 }
 0x106   :  { %1210 = vmatpush3.bf16.msra.mxu0 %v1496_v10  ;;  %v132_v12 = vsel %vm127_vm3, %v1496_v10, 0 }
 0x107   :  { %1204 = vmatpush3.bf16.xpose.msra.mxu1 %v132_v12  ;;  %1221 = vmatprep.subr.bf16.mxu0 %v1426_v0 }
 0x108   :  { %1215 = vmatprep.subr.bf16.mxu1 %v1426_v0 }
 0x10e   :  { %1206 = vmatmul.mubr.msk.bf16.vlgmr.msra.gmra.mrb[0].mxu1 %vm127_vm3, %v126_v14 }
 0x10f   :  { %1217 = vmatprep.mubr.msk.bf16.mxu1 %vm1427_vm0, %v1426_v0 }
 0x1e1   :  { %v168_v19 = vpop.f32.mrb[0].mxu1 }
 0x1e2   :  { %v1207_v20 = vpop.f32.mrb[1].mxu1  ;;  %v188_v21 = vrot.slane %v168_v19, %v187_v17  ;;  %v177_v22 = vrot.slane %v168_v19, %v176_v18  ;;  %v199_v26 = vrot.slane %v168_v19, %v198_v25  ;;  %v210_v28 = vrot.slane %v168_v19, %v209_v27 }
 0x1e3   :  { %v171_v23 = vpop.f32.mrb[2].mxu1  ;;  %v225_v33 = vrot.slane %v168_v19, %v224_v32 }
 0x1e4   :  { %190 = vbcast.lane.b32.xlu1 %v188_v21, 256  ;;  %179 = vbcast.lane.b32.xlu0 %v177_v22, 256  ;;  %v1208_v24 = vpop.f32.mrb[3].mxu1 }
 0x1e5   :  { %v226_v34 = vcombine.high %v225_v33, %v225_v33  ;;  %v233_v37 = vrot.slane %v225_v33, %v224_v32 }
 0x1e7   :  { %v240_v36 = vrot.slane %v226_v34, %v224_v32  ;;  %v246_v39 = vrot.slane %v233_v37, %v1514_v35  ;;  %v241_v44 = vcombine.high %v233_v37, %v233_v37 }
 0x1e8   :  { %194 = vbcast.lane.b32.xlu1 %v188_v21, 264  ;;  %183 = vbcast.lane.b32.xlu0 %v177_v22, 264 }
 0x1e9   :  { %v250_v38 = vrot.slane %v240_v36, %v1514_v35  ;;  %v254_v53 = vrot.slane %v241_v44, %v1514_v35  ;;  %v242_v54 = vcombine.high %v240_v36, %v240_v36 }
 0x1eb   :  { %v258_v2 = vrot.slane %v242_v54, %v1514_v35 }
 0x1ec   :  { %205 = vbcast.lane.b32.xlu1 %v199_v26, 264  ;;  %201 = vbcast.lane.b32.xlu0 %v199_v26, 256 }
 0x1f0   :  { %216 = vbcast.lane.b32.xlu1 %v210_v28, 264  ;;  %212 = vbcast.lane.b32.xlu0 %v210_v28, 256 }
 0x256   :  { %v191_v40 = vpop.permute.xlu1 %190  ;;  %v180_v41 = vpop.permute.xlu0 %179 }
 0x257   :  { %v265_v42 = vadd.f32 %v250_v38, %v191_v40  ;;  %v263_v43 = vadd.f32 %v246_v39, %v180_v41 }
 0x259   :  { %v281_v45 = vmul.f32 0.2, %v265_v42  ;;  %v279_v46 = vmul.f32 0.2, %v263_v43  ;;  %vm271_vm4 = vcmp.ge.f32.partialorder %v263_v43, 0.0  ;;  %vm273_vm6 = vcmp.ge.f32.partialorder %v265_v42, 0.0 }
 0x25a   :  { %v195_v47 = vpop.permute.xlu1 %194  ;;  %v184_v48 = vpop.permute.xlu0 %183 }
 0x25b   :  { %v266_v49 = vadd.f32 %v250_v38, %v195_v47  ;;  %v264_v50 = vadd.f32 %v246_v39, %v184_v48  ;;  %v287_v51 = vsel %vm271_vm4, %v263_v43, %v279_v46  ;;  %v289_v57 = vsel %vm273_vm6, %v265_v42, %v281_v45  ;;  %v1169_v39 = vld [vmem:[#allocation2] sm:$0xff]  }
 0x25c   :  { %v296_v52 = vsel %vm295_vm5, %v287_v51, -inf  ;;  %v302_v63 = vsel %vm295_vm5, %v289_v57, -inf  ;;  %v1529_v44 = vunpack.c.l.bf16 %v1169_v39 }
 0x25d   :  { %v282_v55 = vmul.f32 0.2, %v266_v49  ;;  %v280_v56 = vmul.f32 0.2, %v264_v50  ;;  %297 = vmax.xlane.f32.xlu0 %v296_v52  ;;  %vm272_vm7 = vcmp.ge.f32.partialorder %v264_v50, 0.0  ;;  %vm274_vm8 = vcmp.ge.f32.partialorder %v266_v49, 0.0 }
 0x25e   :  { %v206_v58 = vpop.permute.xlu1 %205  ;;  %v202_v59 = vpop.permute.xlu0 %201 }
 0x25f   :  { %v268_v60 = vadd.f32 %v254_v53, %v206_v58  ;;  %v267_v61 = vadd.f32 %v254_v53, %v202_v59  ;;  %v288_v62 = vsel %vm272_vm7, %v264_v50, %v280_v56  ;;  %v290_v5 = vsel %vm274_vm8, %v266_v49, %v282_v55 }
 0x260   :  { %v299_v1 = vsel %vm295_vm5, %v288_v62, -inf  ;;  %v305_v14 = vsel %vm295_vm5, %v290_v5, -inf  ;;  %v1532_v53 = vunpack.c.h.bf16 %v1169_v39 }
 0x261   :  { %v284_v3 = vmul.f32 0.2, %v268_v60  ;;  %v283_v4 = vmul.f32 0.2, %v267_v61  ;;  %303 = vmax.xlane.f32.xlu0 %v302_v63  ;;  %300 = vmax.xlane.f32.xlu1 %v299_v1  ;;  %vm275_vm9 = vcmp.ge.f32.partialorder %v267_v61, 0.0  ;;  %vm276_vm10 = vcmp.ge.f32.partialorder %v268_v60, 0.0 }
 0x262   :  { %v217_v6 = vpop.permute.xlu1 %216  ;;  %v213_v8 = vpop.permute.xlu0 %212 }
 0x263   :  { %v270_v11 = vadd.f32 %v258_v2, %v217_v6  ;;  %v269_v12 = vadd.f32 %v258_v2, %v213_v8  ;;  %v291_v13 = vsel %vm275_vm9, %v267_v61, %v283_v4  ;;  %v292_v19 = vsel %vm276_vm10, %v268_v60, %v284_v3 }
 0x264   :  { %v308_v15 = vsel %vm295_vm5, %v291_v13, -inf  ;;  %v311_v21 = vsel %vm295_vm5, %v292_v19, -inf }
 0x265   :  { %v286_v17 = vmul.f32 0.2, %v270_v11  ;;  %v285_v18 = vmul.f32 0.2, %v269_v12  ;;  %306 = vmax.xlane.f32.xlu0 %v305_v14  ;;  %309 = vmax.xlane.f32.xlu1 %v308_v15  ;;  %vm277_vm11 = vcmp.ge.f32.partialorder %v269_v12, 0.0  ;;  %vm278_vm12 = vcmp.ge.f32.partialorder %v270_v11, 0.0 }
 0x267   :  { %v293_v20 = vsel %vm277_vm11, %v269_v12, %v285_v18  ;;  %v294_v23 = vsel %vm278_vm12, %v270_v11, %v286_v17 }
 0x268   :  { %v314_v22 = vsel %vm295_vm5, %v293_v20, -inf  ;;  %v317_v24 = vsel %vm295_vm5, %v294_v23, -inf }
 0x269   :  { %312 = vmax.xlane.f32.xlu0 %v311_v21  ;;  %315 = vmax.xlane.f32.xlu1 %v314_v22 }
 0x26d   :  { %318 = vmax.xlane.f32.xlu0 %v317_v24 }
 0x27a   :  { %399 = vrot.lane.b32.xlu1 %v1496_v10, %s1429_s1 }
 0x2ea   :  { %v298_v25 = vpop.xlane.xlu0 %297 }
 0x2eb   :  { %v320_v26 = vsub.f32 %v287_v51, %v298_v25 }
 0x2ed   :  { %v328_v27 = vmul.f32 1.442695, %v320_v26 }
 0x2ee   :  { %v301_v28 = vpop.xlane.xlu1 %300  ;;  %v304_v29 = vpop.xlane.xlu0 %303 }
 0x2ef   :  { %1288 = vpow2.f32 %v328_v27  ;;  %v321_v30 = vsub.f32 %v288_v62, %v301_v28  ;;  %v322_v31 = vsub.f32 %v289_v57, %v304_v29 }
 0x2f1   :  { %v330_v32 = vmul.f32 1.442695, %v321_v30  ;;  %v332_v33 = vmul.f32 1.442695, %v322_v31 }
 0x2f2   :  { %v310_v34 = vpop.xlane.xlu1 %309  ;;  %v307_v36 = vpop.xlane.xlu0 %306 }
 0x2f3   :  { %1290 = vpow2.f32 %v330_v32  ;;  %v324_v37 = vsub.f32 %v291_v13, %v310_v34  ;;  %v323_v38 = vsub.f32 %v290_v5, %v307_v36 }
 0x2f4   :  { %1292 = vpow2.f32 %v332_v33 }
 0x2f5   :  { %v336_v40 = vmul.f32 1.442695, %v324_v37  ;;  %v334_v41 = vmul.f32 1.442695, %v323_v38 }
 0x2f6   :  { %v316_v42 = vpop.xlane.xlu1 %315  ;;  %v313_v43 = vpop.xlane.xlu0 %312 }
 0x2f7   :  { %1294 = vpow2.f32 %v336_v40  ;;  %v326_v45 = vsub.f32 %v293_v20, %v316_v42  ;;  %v325_v46 = vsub.f32 %v292_v19, %v313_v43 }
 0x2f8   :  { %1296 = vpow2.f32 %v334_v41 }
 0x2f9   :  { %v1289_v47 = vpop.eup %1288  ;;  %v340_v48 = vmul.f32 1.442695, %v326_v45  ;;  %v338_v49 = vmul.f32 1.442695, %v325_v46 }
 0x2fa   :  { %v400_v50 = vpop.permute.xlu1 %399  ;;  %v319_v51 = vpop.xlane.xlu0 %318  ;;  %v346_v52 = vmul.f32 %v1289_v47, %v1529_v44 }
 0x2fb   :  { %1298 = vpow2.f32 %v340_v48  ;;  %v327_v54 = vsub.f32 %v294_v23, %v319_v51  ;;  %1216 = vmatpush3.bf16.msra.mxu1 %v400_v50 }
 0x2fc   :  { %1300 = vpow2.f32 %v338_v49  ;;  %v354_v55 = vsel %vm295_vm5, %v346_v52, 0.0  ;;  %1227 = vmatprep.subr.bf16.mxu1 %v1426_v0 }
 0x2fd   :  { %v1291_v56 = vpop.eup %1290  ;;  %v342_v57 = vmul.f32 1.442695, %v327_v54  ;;  %355 = vadd.xlane.f32.xlu1 %v354_v55 }
 0x2fe   :  { %v1293_v58 = vpop.eup %1292  ;;  %v347_v59 = vmul.f32 %v1291_v56, %v1532_v53 }
 0x2ff   :  { %1302 = vpow2.f32 %v342_v57  ;;  %v348_v60 = vmul.f32 %v1293_v58, %v1529_v44 }
 0x300   :  { %v357_v61 = vsel %vm295_vm5, %v347_v59, 0.0 }
 0x301   :  { %v1295_v62 = vpop.eup %1294  ;;  %358 = vadd.xlane.f32.xlu0 %v357_v61  ;;  %v360_v63 = vsel %vm295_vm5, %v348_v60, 0.0 }
 0x302   :  { %v1297_v1 = vpop.eup %1296  ;;  %361 = vadd.xlane.f32.xlu1 %v360_v63  ;;  %v350_v2 = vmul.f32 %v1295_v62, %v1529_v44 }
 0x303   :  { %v349_v3 = vmul.f32 %v1297_v1, %v1532_v53 }
 0x304   :  { %v366_v4 = vsel %vm295_vm5, %v350_v2, 0.0 }
 0x305   :  { %v1299_v5 = vpop.eup %1298  ;;  %v363_v6 = vsel %vm295_vm5, %v349_v3, 0.0 }
 0x306   :  { %v1301_v8 = vpop.eup %1300  ;;  %364 = vadd.xlane.f32.xlu0 %v363_v6  ;;  %367 = vadd.xlane.f32.xlu1 %v366_v4  ;;  %v352_v11 = vmul.f32 %v1299_v5, %v1529_v44  ;;  %v49_v4 = vld [vmem:[#allocation5 + $0x30] sm:$0xff]  ;;  %v50_v5 = vld [vmem:[#allocation5 + $0x38] sm:$0xff]  ;;  %v51_v6 = vld [vmem:[#allocation5 + $0x40] sm:$0xff] }
 0x307   :  { %v351_v12 = vmul.f32 %v1301_v8, %v1532_v53  ;;  %v680_v8 = vpack.c.bf16 %v50_v5, %v49_v4 }
 0x308   :  { %v372_v13 = vsel %vm295_vm5, %v352_v11, 0.0 }
 0x309   :  { %v1303_v14 = vpop.eup %1302  ;;  %v369_v15 = vsel %vm295_vm5, %v351_v12, 0.0 }
 0x30a   :  { %370 = vadd.xlane.f32.xlu0 %v369_v15  ;;  %373 = vadd.xlane.f32.xlu1 %v372_v13  ;;  %v353_v17 = vmul.f32 %v1303_v14, %v1532_v53  ;;  %v45_v15 = vld [vmem:[#allocation5 + $0x10] sm:$0xff] }
 0x30c   :  { %v375_v18 = vsel %vm295_vm5, %v353_v17, 0.0 }
 0x30e   :  { %376 = vadd.xlane.f32.xlu0 %v375_v18 }
 0x31b   :  { %405 = vrot.lane.b32.xlu1 %v1496_v10, %s1430_s8 }
 0x324   :  { %402 = vrot.lane.b32.xlu0 %v1496_v10, %s1431_s9 }
 0x38a   :  { %v356_v19 = vpop.xlane.xlu1 %355 }
 0x38b   :  { %1304 = vrcp.f32 %v356_v19  ;;  %v618_v19 = vrot.slane %v45_v15, %v1514_v35 }
 0x38e   :  { %v359_v20 = vpop.xlane.xlu0 %358 }
 0x38f   :  { %1306 = vrcp.f32 %v359_v20  ;;  %v362_v21 = vpop.xlane.xlu1 %361 }
 0x390   :  { %1308 = vrcp.f32 %v362_v21 }
 0x393   :  { %v365_v22 = vpop.xlane.xlu0 %364  ;;  %v368_v23 = vpop.xlane.xlu1 %367 }
 0x394   :  { %1310 = vrcp.f32 %v365_v22 }
 0x395   :  { %1312 = vrcp.f32 %v368_v23  ;;  %v1305_v24 = vpop.eup %1304 }
 0x396   :  { %v386_v28 = vmul.f32 %v1305_v24, %v346_v52 }
 0x397   :  { %v371_v25 = vpop.xlane.xlu0 %370  ;;  %v374_v26 = vpop.xlane.xlu1 %373 }
 0x398   :  { %1314 = vrcp.f32 %v371_v25 }
 0x399   :  { %v1307_v27 = vpop.eup %1306  ;;  %1316 = vrcp.f32 %v374_v26 }
 0x39a   :  { %v387_v29 = vmul.f32 %v1307_v27, %v347_v59  ;;  %v1309_v10 = vpop.eup %1308 }
 0x39b   :  { %v377_v30 = vpop.xlane.xlu0 %376  ;;  %v388_v33 = vmul.f32 %v1309_v10, %v348_v60  ;;  %v406_v42 = vpop.permute.xlu1 %405 }
 0x39c   :  { %1318 = vrcp.f32 %v377_v30  ;;  %v394_v31 = vpack.c.bf16 %v387_v29, %v386_v28 }
 0x39e   :  { %v1311_v32 = vpop.eup %1310  ;;  %1212 = vmatmul.mubr.msk.bf16.vlgmr.msra.gmra.mrb[4].mxu0 %vm295_vm5, %v394_v31 }
 0x39f   :  { %v389_v34 = vmul.f32 %v1311_v32, %v349_v3  ;;  %v403_v36 = vpop.permute.xlu0 %402  ;;  %1223 = vmatprep.mubr.msk.bf16.mxu0 %vm1427_vm0, %v1426_v0  ;;  %v1313_v37 = vpop.eup %1312 }
 0x3a0   :  { %1222 = vmatpush3.bf16.msra.mxu0 %v403_v36  ;;  %v390_v40 = vmul.f32 %v1313_v37, %v350_v2 }
 0x3a1   :  { %v395_v38 = vpack.c.bf16 %v389_v34, %v388_v33  ;;  %1233 = vmatprep.subr.bf16.mxu0 %v1426_v0 }
 0x3a2   :  { %v1315_v39 = vpop.eup %1314 }
 0x3a3   :  { %v391_v41 = vmul.f32 %v1315_v39, %v351_v12  ;;  %1218 = vmatmul.mubr.msk.bf16.vlgmr.msra.gmra.mrb[4].mxu1 %vm295_vm5, %v395_v38  ;;  %v1317_v43 = vpop.eup %1316  ;;  %v48_v39 = vld [vmem:[#allocation5 + $0x28] sm:$0xff] }
 0x3a4   :  { %1228 = vmatpush3.bf16.msra.mxu1 %v406_v42  ;;  %1229 = vmatprep.mubr.msk.bf16.mxu1 %vm1427_vm0, %v1426_v0  ;;  %v392_v47 = vmul.f32 %v1317_v43, %v352_v11  ;;  %v52_v11 = vld [vmem:[#allocation5 + $0x48] sm:$0xff] }
 0x3a5   :  { %v396_v45 = vpack.c.bf16 %v391_v41, %v390_v40  ;;  %1241 = vmatprep.subr.bf16.mxu1 %v1426_v0  ;;  %v681_v12 = vpack.c.bf16 %v52_v11, %v51_v6 }
 0x3a6   :  { %v1319_v46 = vpop.eup %1318 }
 0x3a7   :  { %v393_v48 = vmul.f32 %v1319_v46, %v353_v17  ;;  %1224 = vmatmul.mubr.msk.bf16.vlgmr.msra.gmra.mrb[8].mxu0 %vm295_vm5, %v396_v45 }
 0x3a8   :  { %1237 = vmatprep.mubr.msk.bf16.mxu0 %vm1427_vm0, %v1426_v0  ;;  %1234 = vmatpush3.bf16.msra.mxu0 %v680_v8 }
 0x3a9   :  { %v397_v49 = vpack.c.bf16 %v393_v48, %v392_v47  ;;  %1235 = vmatprep.subr.bf16.mxu0 %v1426_v0 }
 0x3ab   :  { %1230 = vmatmul.mubr.msk.bf16.vlgmr.msra.gmra.mrb[8].mxu1 %vm295_vm5, %v397_v49 }
 0x3ac   :  { %1243 = vmatprep.mubr.msk.bf16.mxu1 %vm1427_vm0, %v1426_v0  ;;  %1236 = vmatpush3.bf16.msra.mxu0 %v681_v12 }
 0x3ad   :  { %1247 = vmatprep.subr.bf16.mxu0 %v1426_v0 }
 0x471   :  { %v445_v50 = vpop.f32.mrb[4].mxu0 }
 0x472   :  { %v1213_v51 = vpop.f32.mrb[5].mxu0 }
 0x473   :  { %v448_v52 = vpop.f32.mrb[6].mxu0 }
 0x474   :  { %v1214_v54 = vpop.f32.mrb[7].mxu0 }
 0x476   :  { %v489_v55 = vpop.f32.mrb[4].mxu1 }
 0x477   :  { %586 = vrot.lane.b32.xlu1 %v489_v55, %s1425_s5  ;;  %v1219_v56 = vpop.f32.mrb[5].mxu1 }
 0x478   :  { %v492_v57 = vpop.f32.mrb[6].mxu1 }
 0x479   :  { %588 = vrot.lane.b32.xlu0 %v492_v57, %s1425_s5  ;;  %v1220_v58 = vpop.f32.mrb[7].mxu1 }
 0x47a   :  { %v533_v59 = vpop.f32.mrb[8].mxu0 }
 0x47b   :  { %594 = vrot.lane.b32.xlu1 %v533_v59, %s1432_s10  ;;  %v1225_v60 = vpop.f32.mrb[9].mxu0 }
 0x47c   :  { %v536_v61 = vpop.f32.mrb[10].mxu0  ;;  %v46_v60 = vld [vmem:[#allocation5 + $0x18] sm:$0xff] }
 0x47d   :  { %596 = vrot.lane.b32.xlu0 %v536_v61, %s1432_s10  ;;  %v1226_v62 = vpop.f32.mrb[11].mxu0  ;;  %v654_v61 = vrot.slane %v46_v60, %v1514_v35 }
 0x47e   :  { %v577_v63 = vpop.f32.mrb[8].mxu1  ;;  %v47_v62 = vld [vmem:[#allocation5 + $0x20] sm:$0xff] }
 0x47f   :  { %602 = vrot.lane.b32.xlu1 %v577_v63, %s1433_s11  ;;  %v1231_v1 = vpop.f32.mrb[9].mxu1  ;;  %v664_v63 = vrot.slane %v47_v62, %v1514_v35 }
 0x480   :  { %v580_v2 = vpop.f32.mrb[10].mxu1 }
 0x481   :  { %604 = vrot.lane.b32.xlu0 %v580_v2, %s1433_s11  ;;  %v1232_v3 = vpop.f32.mrb[11].mxu1 }
 0x4e9   :  { %v587_v13 = vpop.permute.xlu1 %586 }
 0x4ea   :  { %v608_v20 = vsel %vm66_vm2, %v445_v50, %v587_v13 }
 0x4eb   :  { %v589_v14 = vpop.permute.xlu0 %588 }
 0x4ec   :  { %v609_v23 = vsel %vm66_vm2, %v448_v52, %v589_v14 }
 0x4ed   :  { %v595_v17 = vpop.permute.xlu1 %594 }
 0x4ee   :  { %v610_v21 = vsel %vm295_vm5, %v608_v20, %v595_v17 }
 0x4ef   :  { %v597_v18 = vpop.permute.xlu0 %596 }
 0x4f0   :  { %v611_v25 = vsel %vm295_vm5, %v609_v23, %v597_v18 }
 0x4f1   :  { %v603_v22 = vpop.permute.xlu1 %602 }
 0x4f2   :  { %v613_v24 = vsel %vm612_vm13, %v610_v21, %v603_v22 }
 0x4f3   :  { %v619_v26 = vadd.f32 %v618_v19, %v613_v24  ;;  %v605_v27 = vpop.permute.xlu0 %604 }
 0x4f4   :  { %v614_v28 = vsel %vm612_vm13, %v611_v25, %v605_v27 }
 0x4f5   :  { %v620_v29 = vadd.f32 %v618_v19, %v614_v28  ;;  %v621_v30 = vsel %vm127_vm3, %v619_v26, 0.0  ;;  %v58_v28 = vld [vmem:[#allocation5 + $0x78] sm:$0xff] }
 0x4f7   :  { %v622_v10 = vsel %vm127_vm3, %v620_v29, 0.0 }
 0x4f8   :  { %v623_v31 = vadd.f32 %v622_v10, %v621_v30  ;;  %v53_v30 = vld [vmem:[#allocation5 + $0x50] sm:$0xff]  ;;  %v928_v10 = vpack.c.bf16 %v58_v28, %v58_v28 }
 0x4fa   :  { %v624_v32 = vrot.slane %v623_v31, 4 }
 0x4fc   :  { %v625_v33 = vadd.f32 %v624_v32, %v623_v31  ;;  %v727_v31 = vpack.c.bf16 %v53_v30, %v53_v30  ;;  %v933_v32 = vsel %vm70_vm1, %v928_v10, 0  ;;  %v57_v30 = vld [vmem:[#allocation5 + $0x70] sm:$0xff] }
 0x4fe   :  { %v626_v34 = vrot.slane %v625_v33, 2 }
 0x500   :  { %v627_v36 = vadd.f32 %v626_v34, %v625_v33  ;;  %v776_v33 = vsub.s32 1, %v1506_v16 }
 0x502   :  { %v628_v37 = vrot.slane %v627_v36, 1 }
 0x504   :  { %v629_v38 = vadd.f32 %v628_v37, %v627_v36 }
 0x506   :  { %v631_v40 = vmul.f32 0.0625, %v629_v38 }
 0x508   :  { %v632_v41 = vmul.f32 %v631_v40, %v48_v39 }
 0x50a   :  { %v636_v42 = vrot.slane %v632_v41, %v1514_v35 }
 0x50c   :  { %v637_v43 = vsub.f32 %v619_v26, %v636_v42  ;;  %v638_v45 = vsub.f32 %v620_v29, %v636_v42 }
 0x50e   :  { %v639_v46 = vmul.f32 %v637_v43, %v637_v43  ;;  %v640_v47 = vmul.f32 %v638_v45, %v638_v45  ;;  %v655_v1 = vmul.f32 %v654_v61, %v637_v43  ;;  %v656_v2 = vmul.f32 %v654_v61, %v638_v45 }
 0x510   :  { %v641_v48 = vsel %vm127_vm3, %v639_v46, 0.0  ;;  %v642_v49 = vsel %vm127_vm3, %v640_v47, 0.0 }
 0x511   :  { %v643_v50 = vadd.f32 %v642_v49, %v641_v48 }
 0x513   :  { %v644_v51 = vrot.slane %v643_v50, 4 }
 0x515   :  { %v645_v52 = vadd.f32 %v644_v51, %v643_v50 }
 0x517   :  { %v646_v54 = vrot.slane %v645_v52, 2 }
 0x519   :  { %v647_v55 = vadd.f32 %v646_v54, %v645_v52 }
 0x51b   :  { %v648_v56 = vrot.slane %v647_v55, 1 }
 0x51d   :  { %v649_v57 = vadd.f32 %v648_v56, %v647_v55 }
 0x51f   :  { %v650_v58 = vmul.f32 0.0625, %v649_v57 }
 0x521   :  { %v657_v59 = vadd.f32 1e-05, %v650_v58 }
 0x523   :  { %1320 = vrsqrt.f32 %v657_v59 }
 0x52d   :  { %v1321_v3 = vpop.eup %1320 }
 0x52e   :  { %v659_v4 = vmul.f32 %v1321_v3, %v655_v1  ;;  %v660_v5 = vmul.f32 %v1321_v3, %v656_v2 }
 0x530   :  { %v665_v6 = vadd.f32 %v664_v63, %v659_v4  ;;  %v666_v8 = vadd.f32 %v664_v63, %v660_v5 }
 0x532   :  { %v669_v11 = vmin.f32 %v665_v6, 0.0  ;;  %v670_v12 = vmin.f32 %v666_v8, 0.0  ;;  %vm668_vm14 = vcmp.gt.f32.partialorder %v666_v8, 0.0  ;;  %vm667_vm15 = vcmp.gt.f32.partialorder %v665_v6, 0.0 }
 0x534   :  { %v671_v13 = vmul.f32 1.442695, %v669_v11  ;;  %v673_v14 = vmul.f32 1.442695, %v670_v12  ;;  %v54_v12 = vld [vmem:[#allocation5 + $0x58] sm:$0xff] }
 0x536   :  { %1322 = vpow2.f32 %v673_v14 }
 0x537   :  { %1324 = vpow2.f32 %v671_v13  ;;  %v825_v13 = vrot.slane %v54_v12, %v1514_v35 }
 0x540   :  { %v1323_v15 = vpop.eup %1322 }
 0x541   :  { %v1325_v17 = vpop.eup %1324  ;;  %v1159_v18 = vadd.f32 -1.0, %v1323_v15 }
 0x542   :  { %v1158_v19 = vadd.f32 -1.0, %v1325_v17 }
 0x543   :  { %v678_v20 = vsel %vm668_vm14, %v666_v8, %v1159_v18 }
 0x544   :  { %v677_v21 = vsel %vm667_vm15, %v665_v6, %v1158_v19 }
 0x545   :  { %v679_v22 = vpack.c.bf16 %v678_v20, %v677_v21 }
 0x547   :  { %1238 = vmatmul.mubr.msk.bf16.vlgmr.msra.gmra.mrb[12].mxu0 %vm127_vm3, %v679_v22 }
 0x548   :  { %1249 = vmatprep.mubr.msk.bf16.mxu0 %vm1427_vm0, %v1426_v0 }
 0x61a   :  { %v719_v23 = vpop.f32.mrb[12].mxu0 }
 0x61b   :  { %v1239_v24 = vpop.f32.mrb[13].mxu0 }
 0x61c   :  { %v722_v25 = vpop.f32.mrb[14].mxu0 }
 0x61d   :  { %v726_v26 = vpack.c.bf16 %v722_v25, %v719_v23  ;;  %v1240_v27 = vpop.f32.mrb[15].mxu0 }
 0x61f   :  { %v732_v29 = vsel %vm66_vm2, %v726_v26, 0  ;;  %1248 = vmatpush3.bf16.msra.mxu0 %v726_v26 }
 0x620   :  { %1242 = vmatpush3.bf16.xpose.msra.mxu1 %v732_v29  ;;  %1259 = vmatprep.subr.bf16.mxu0 %v1426_v0 }
 0x621   :  { %1253 = vmatprep.subr.bf16.mxu1 %v1426_v0 }
 0x627   :  { %1244 = vmatmul.mubr.msk.bf16.vlgmr.msra.gmra.mrb[12].mxu1 %vm66_vm2, %v727_v31 }
 0x628   :  { %1254 = vmatpush3.bf16.msra.mxu1 %v933_v32  ;;  %1255 = vmatprep.mubr.msk.bf16.mxu1 %vm1427_vm0, %v1426_v0 }
 0x629   :  { %1265 = vmatprep.subr.bf16.mxu1 %v1426_v0 }
 0x6fa   :  { %v768_v34 = vpop.f32.mrb[12].mxu1 }
 0x6fb   :  { %v1245_v36 = vpop.f32.mrb[13].mxu1  ;;  %v777_v37 = vrot.slane %v768_v34, %v776_v33  ;;  %v788_v40 = vrot.slane %v768_v34, %v1514_v35 }
 0x6fc   :  { %v771_v38 = vpop.f32.mrb[14].mxu1 }
 0x6fd   :  { %783 = vbcast.lane.b32.xlu0 %v777_v37, 264  ;;  %779 = vbcast.lane.b32.xlu1 %v777_v37, 256  ;;  %v1246_v39 = vpop.f32.mrb[15].mxu1 }
 0x76f   :  { %v784_v41 = vpop.permute.xlu0 %783  ;;  %v780_v42 = vpop.permute.xlu1 %779 }
 0x770   :  { %v790_v43 = vadd.f32 %v788_v40, %v784_v41  ;;  %v789_v45 = vadd.f32 %v788_v40, %v780_v42 }
 0x772   :  { %v794_v46 = vmul.f32 0.2, %v790_v43  ;;  %v793_v47 = vmul.f32 0.2, %v789_v45  ;;  %vm792_vm1 = vcmp.ge.f32.partialorder %v790_v43, 0.0  ;;  %vm791_vm3 = vcmp.ge.f32.partialorder %v789_v45, 0.0 }
 0x774   :  { %v796_v48 = vsel %vm792_vm1, %v790_v43, %v794_v46  ;;  %v795_v49 = vsel %vm791_vm3, %v789_v45, %v793_v47 }
 0x775   :  { %v800_v50 = vsel %vm295_vm5, %v796_v48, -inf  ;;  %v797_v51 = vsel %vm295_vm5, %v795_v49, -inf }
 0x776   :  { %801 = vmax.xlane.f32.xlu0 %v800_v50  ;;  %798 = vmax.xlane.f32.xlu1 %v797_v51  ;;  %v55_v51 = vld [vmem:[#allocation5 + $0x60] sm:$0xff] }
 0x803   :  { %v802_v52 = vpop.xlane.xlu0 %801  ;;  %v799_v54 = vpop.xlane.xlu1 %798 }
 0x804   :  { %v804_v55 = vsub.f32 %v796_v48, %v802_v52  ;;  %v803_v56 = vsub.f32 %v795_v49, %v799_v54  ;;  %v902_v52 = vrot.slane %v55_v51, %v1514_v35  ;;  %v56_v54 = vld [vmem:[#allocation5 + $0x68] sm:$0xff] }
 0x806   :  { %v807_v57 = vmul.f32 1.442695, %v804_v55  ;;  %v805_v58 = vmul.f32 1.442695, %v803_v56 }
 0x808   :  { %1326 = vpow2.f32 %v807_v57  ;;  %v912_v57 = vrot.slane %v56_v54, %v1514_v35 }
 0x809   :  { %1328 = vpow2.f32 %v805_v58 }
 0x812   :  { %v1327_v59 = vpop.eup %1326 }
 0x813   :  { %v1329_v60 = vpop.eup %1328  ;;  %v810_v61 = vmul.f32 %v1327_v59, %v1532_v53 }
 0x814   :  { %v809_v62 = vmul.f32 %v1329_v60, %v1529_v44 }
 0x815   :  { %v814_v63 = vsel %vm295_vm5, %v810_v61, 0.0 }
 0x816   :  { %815 = vadd.xlane.f32.xlu1 %v814_v63  ;;  %v811_v1 = vsel %vm295_vm5, %v809_v62, 0.0 }
 0x817   :  { %812 = vadd.xlane.f32.xlu0 %v811_v1 }
 0x8a3   :  { %v816_v2 = vpop.xlane.xlu1 %815 }
 0x8a4   :  { %v813_v3 = vpop.xlane.xlu0 %812  ;;  %1330 = vrcp.f32 %v816_v2 }
 0x8a5   :  { %1332 = vrcp.f32 %v813_v3 }
 0x8ae   :  { %v1331_v4 = vpop.eup %1330 }
 0x8af   :  { %v1333_v5 = vpop.eup %1332  ;;  %v820_v6 = vmul.f32 %v1331_v4, %v810_v61 }
 0x8b0   :  { %v819_v8 = vmul.f32 %v1333_v5, %v809_v62 }
 0x8b2   :  { %v821_v11 = vpack.c.bf16 %v820_v6, %v819_v8 }
 0x8b4   :  { %1250 = vmatmul.mubr.msk.bf16.vlgmr.msra.gmra.mrb[16].mxu0 %vm295_vm5, %v821_v11 }
 0x8b5   :  { %1261 = vmatprep.mubr.msk.bf16.mxu0 %vm1427_vm0, %v1426_v0 }
 0x987   :  { %v863_v14 = vpop.f32.mrb[16].mxu0 }
 0x988   :  { %v864_v15 = vadd.f32 %v863_v14, %v825_v13  ;;  %v1251_v17 = vpop.f32.mrb[17].mxu0 }
 0x989   :  { %v866_v18 = vpop.f32.mrb[18].mxu0 }
 0x98a   :  { %v867_v19 = vadd.f32 %v866_v18, %v825_v13  ;;  %v1252_v20 = vpop.f32.mrb[19].mxu0  ;;  %v870_v21 = vsel %vm66_vm2, %v864_v15, 0.0 }
 0x98c   :  { %v871_v22 = vsel %vm66_vm2, %v867_v19, 0.0 }
 0x98d   :  { %v872_v23 = vadd.f32 %v871_v22, %v870_v21  ;;  %v59_v21 = vld [vmem:[#allocation5 + $0x80] sm:$0xff] }
 0x98e   :  { %v977_v22 = vpack.c.bf16 %v59_v21, %v59_v21 }
 0x98f   :  { %v873_v24 = vrot.slane %v872_v23, 4 }
 0x991   :  { %v874_v25 = vadd.f32 %v873_v24, %v872_v23 }
 0x993   :  { %v875_v26 = vrot.slane %v874_v25, 2 }
 0x995   :  { %v876_v27 = vadd.f32 %v875_v26, %v874_v25 }
 0x997   :  { %v877_v28 = vrot.slane %v876_v27, 1 }
 0x999   :  { %v878_v29 = vadd.f32 %v877_v28, %v876_v27 }
 0x99b   :  { %v879_v10 = vmul.f32 0.0625, %v878_v29 }
 0x99d   :  { %v880_v31 = vmul.f32 %v879_v10, %v57_v30 }
 0x99f   :  { %v884_v32 = vrot.slane %v880_v31, %v1514_v35 }
 0x9a1   :  { %v885_v34 = vsub.f32 %v864_v15, %v884_v32  ;;  %v886_v36 = vsub.f32 %v867_v19, %v884_v32 }
 0x9a3   :  { %v887_v37 = vmul.f32 %v885_v34, %v885_v34  ;;  %v888_v38 = vmul.f32 %v886_v36, %v886_v36  ;;  %v903_v55 = vmul.f32 %v902_v52, %v885_v34  ;;  %v904_v56 = vmul.f32 %v902_v52, %v886_v36 }
 0x9a5   :  { %v889_v39 = vsel %vm66_vm2, %v887_v37, 0.0  ;;  %v890_v40 = vsel %vm66_vm2, %v888_v38, 0.0 }
 0x9a6   :  { %v891_v41 = vadd.f32 %v890_v40, %v889_v39 }
 0x9a8   :  { %v892_v42 = vrot.slane %v891_v41, 4 }
 0x9aa   :  { %v893_v43 = vadd.f32 %v892_v42, %v891_v41 }
 0x9ac   :  { %v894_v45 = vrot.slane %v893_v43, 2 }
 0x9ae   :  { %v895_v46 = vadd.f32 %v894_v45, %v893_v43 }
 0x9b0   :  { %v896_v47 = vrot.slane %v895_v46, 1 }
 0x9b2   :  { %v897_v48 = vadd.f32 %v896_v47, %v895_v46 }
 0x9b4   :  { %v898_v49 = vmul.f32 0.0625, %v897_v48 }
 0x9b6   :  { %v905_v50 = vadd.f32 1e-05, %v898_v49 }
 0x9b8   :  { %1334 = vrsqrt.f32 %v905_v50  ;;  %v61_v50 = vld [vmem:[#allocation5 + $0x90] sm:$0xff] }
 0x9b9   :  { %v118_v51 = vrot.slane %v61_v50, %v1514_v35 }
 0x9c2   :  { %v1335_v58 = vpop.eup %1334 }
 0x9c3   :  { %v907_v59 = vmul.f32 %v1335_v58, %v903_v55  ;;  %v908_v60 = vmul.f32 %v1335_v58, %v904_v56 }
 0x9c5   :  { %v913_v61 = vadd.f32 %v912_v57, %v907_v59  ;;  %v914_v62 = vadd.f32 %v912_v57, %v908_v60 }
 0x9c7   :  { %v917_v63 = vmin.f32 %v913_v61, 0.0  ;;  %v918_v1 = vmin.f32 %v914_v62, 0.0  ;;  %vm915_vm4 = vcmp.gt.f32.partialorder %v913_v61, 0.0  ;;  %vm916_vm6 = vcmp.gt.f32.partialorder %v914_v62, 0.0 }
 0x9c9   :  { %v919_v2 = vmul.f32 1.442695, %v917_v63  ;;  %v921_v3 = vmul.f32 1.442695, %v918_v1 }
 0x9cb   :  { %1336 = vpow2.f32 %v919_v2 }
 0x9cc   :  { %1338 = vpow2.f32 %v921_v3 }
 0x9d5   :  { %v1337_v4 = vpop.eup %1336 }
 0x9d6   :  { %v1339_v5 = vpop.eup %1338  ;;  %v1163_v6 = vadd.f32 -1.0, %v1337_v4 }
 0x9d7   :  { %v1164_v8 = vadd.f32 -1.0, %v1339_v5 }
 0x9d8   :  { %v925_v11 = vsel %vm915_vm4, %v913_v61, %v1163_v6  ;;  %v60_v61 = vld [vmem:[#allocation5 + $0x88] sm:$0xff] }
 0x9d9   :  { %v926_v12 = vsel %vm916_vm6, %v914_v62, %v1164_v8  ;;  %v1075_v62 = vrot.slane %v60_v61, %v1514_v35 }
 0x9da   :  { %v927_v13 = vpack.c.bf16 %v926_v12, %v925_v11 }
 0x9dc   :  { %1256 = vmatmul.mubr.msk.bf16.vlgmr.msra.gmra.mrb[16].mxu1 %vm66_vm2, %v927_v13 }
 0x9dd   :  { %1267 = vmatprep.mubr.msk.bf16.mxu1 %vm1427_vm0, %v1426_v0 }
 0xaaf   :  { %v969_v14 = vpop.f32.mrb[16].mxu1 }
 0xab0   :  { %v1257_v15 = vpop.f32.mrb[17].mxu1 }
 0xab1   :  { %v972_v17 = vpop.f32.mrb[18].mxu1 }
 0xab2   :  { %v976_v18 = vpack.c.bf16 %v972_v17, %v969_v14  ;;  %v1258_v19 = vpop.f32.mrb[19].mxu1 }
 0xab4   :  { %v982_v20 = vsel %vm66_vm2, %v976_v18, 0  ;;  %1266 = vmatpush3.bf16.msra.mxu1 %v976_v18 }
 0xab5   :  { %1260 = vmatpush3.bf16.xpose.msra.mxu0 %v982_v20 }
 0xabc   :  { %1262 = vmatmul.mubr.msk.bf16.vlgmr.msra.gmra.mrb[20].mxu0 %vm66_vm2, %v977_v22 }
 0xb8f   :  { %v1018_v23 = vpop.f32.mrb[20].mxu0 }
 0xb90   :  { %v1263_v24 = vpop.f32.mrb[21].mxu0  ;;  %v1027_v25 = vrot.slane %v1018_v23, %v776_v33  ;;  %v1038_v27 = vrot.slane %v1018_v23, %v1514_v35 }
 0xb91   :  { %v1021_v26 = vpop.f32.mrb[22].mxu0 }
 0xb92   :  { %1033 = vbcast.lane.b32.xlu1 %v1027_v25, 264  ;;  %1029 = vbcast.lane.b32.xlu0 %v1027_v25, 256  ;;  %v1264_v0 = vpop.f32.mrb[23].mxu0 }
 0xc04   :  { %v1034_v28 = vpop.permute.xlu1 %1033  ;;  %v1030_v29 = vpop.permute.xlu0 %1029 }
 0xc05   :  { %v1040_v30 = vadd.f32 %v1038_v27, %v1034_v28  ;;  %v1039_v10 = vadd.f32 %v1038_v27, %v1030_v29 }
 0xc07   :  { %v1044_v31 = vmul.f32 0.2, %v1040_v30  ;;  %v1043_v32 = vmul.f32 0.2, %v1039_v10  ;;  %vm1042_vm0 = vcmp.ge.f32.partialorder %v1040_v30, 0.0  ;;  %vm1041_vm7 = vcmp.ge.f32.partialorder %v1039_v10, 0.0 }
 0xc09   :  { %v1046_v34 = vsel %vm1042_vm0, %v1040_v30, %v1044_v31  ;;  %v1045_v36 = vsel %vm1041_vm7, %v1039_v10, %v1043_v32 }
 0xc0a   :  { %v1050_v37 = vsel %vm295_vm5, %v1046_v34, -inf  ;;  %v1047_v16 = vsel %vm295_vm5, %v1045_v36, -inf }
 0xc0b   :  { %1051 = vmax.xlane.f32.xlu0 %v1050_v37  ;;  %1048 = vmax.xlane.f32.xlu1 %v1047_v16 }
 0xc98   :  { %v1049_v33 = vpop.xlane.xlu1 %1048  ;;  %v1052_v38 = vpop.xlane.xlu0 %1051 }
 0xc99   :  { %v1053_v39 = vsub.f32 %v1045_v36, %v1049_v33  ;;  %v1054_v40 = vsub.f32 %v1046_v34, %v1052_v38 }
 0xc9b   :  { %v1055_v41 = vmul.f32 1.442695, %v1053_v39  ;;  %v1057_v42 = vmul.f32 1.442695, %v1054_v40 }
 0xc9d   :  { %1340 = vpow2.f32 %v1055_v41 }
 0xc9e   :  { %1342 = vpow2.f32 %v1057_v42 }
 0xca7   :  { %v1341_v43 = vpop.eup %1340 }
 0xca8   :  { %v1343_v45 = vpop.eup %1342  ;;  %v1059_v46 = vmul.f32 %v1341_v43, %v1529_v44 }
 0xca9   :  { %v1060_v47 = vmul.f32 %v1343_v45, %v1532_v53 }
 0xcaa   :  { %v1061_v48 = vsel %vm295_vm5, %v1059_v46, 0.0 }
 0xcab   :  { %1062 = vadd.xlane.f32.xlu0 %v1061_v48  ;;  %v1064_v49 = vsel %vm295_vm5, %v1060_v47, 0.0 }
 0xcac   :  { %1065 = vadd.xlane.f32.xlu1 %v1064_v49 }
 0xcc1   :  { %120 = vrot.lane.b32.xlu0 %v118_v51, %s1434_s12 }
 0xd38   :  { %v1063_v52 = vpop.xlane.xlu0 %1062 }
 0xd39   :  { %v1066_v54 = vpop.xlane.xlu1 %1065  ;;  %1344 = vrcp.f32 %v1063_v52 }
 0xd3a   :  { %1346 = vrcp.f32 %v1066_v54 }
 0xd3c   :  { %v121_v55 = vpop.permute.xlu0 %120 }
 0xd3d   :  { %v123_v44 = vadd.f32 %v121_v55, %v1490_v7  ;;  %v124_v53 = vadd.f32 %v121_v55, %v1492_v9 }
 0xd3f   :  { %1122 = vrot.lane.b32.xlu1 %v123_v44, %s1435_s13 }
 0xd43   :  { %v1345_v56 = vpop.eup %1344  ;;  %1124 = vrot.lane.b32.xlu1 %v124_v53, %s1435_s13 }
 0xd44   :  { %v1347_v57 = vpop.eup %1346  ;;  %v1069_v58 = vmul.f32 %v1345_v56, %v1059_v46 }
 0xd45   :  { %v1070_v59 = vmul.f32 %v1347_v57, %v1060_v47 }
 0xd47   :  { %v1071_v60 = vpack.c.bf16 %v1070_v59, %v1069_v58 }
 0xd49   :  { %1268 = vmatmul.mubr.msk.bf16.vlgmr.msra.gmra.mrb[20].mxu1 %vm295_vm5, %v1071_v60 }
 0xdb1   :  { %v1123_v63 = vpop.permute.xlu1 %1122 }
 0xdb5   :  { %v1125_v9 = vpop.permute.xlu1 %1124 }
 0xe1c   :  { %v1113_v1 = vpop.f32.mrb[20].mxu1 }
 0xe1d   :  { %v1114_v2 = vadd.f32 %v1113_v1, %v1075_v62  ;;  %v1269_v3 = vpop.f32.mrb[21].mxu1 }
 0xe1e   :  { %v1116_v7 = vpop.f32.mrb[22].mxu1 }
 0xe1f   :  { %v1128_v4 = vadd.f32 %v1123_v63, %v1114_v2  ;;  %v1117_v5 = vadd.f32 %v1116_v7, %v1075_v62  ;;  %v1270_v6 = vpop.f32.mrb[23].mxu1 }
 0xe21   :  { %v1129_v8 = vadd.f32 %v1125_v9, %v1117_v5  ;;  %v1130_v11 = vsel %vm66_vm2, %v1128_v4, 0.0 }
 0xe22   :  { %1132 = vst [vmem:[#allocation7] sm:$0xff] %v1130_v11 }
 0xe23   :  { %v1131_v12 = vsel %vm66_vm2, %v1129_v8, 0.0 }
 0xe24   :  { %1133 = vst [vmem:[#allocation7 + $0x8] sm:$0xff] %v1131_v12 }
 0xe25   :  { %1403 = shalt.err (!%p1400_p6)
}
 0xe26   :  { %s1404_s19 = scalar_lea.hbm %s1652_s2, 256 }
 0xe27   :  { %p1405_p7 = scmp.ne.s32.totalorder %s1652_s2, %s1404_s19  ;;  %p1408_p8 = scmp.lt.u32.totalorder %s1404_s19, %s1652_s2 }
 0xe29   :  { %p1410_p9 = pnand %p1408_p8, %p1405_p7 }
 0xe2b   :  { %1413 = shalt.err (!%p1410_p9)
}
 0xe2c   :  { %1145 = dma.vmem_to_hbm [thread:$0]  %s1140_s15, 256, %s1652_s2, [#allocation4], %s1424_s0, %s1424_s0, %s1425_s5  }
 0xe2d   :  { %1418 = dma.done.wait [#allocation4], 256  }
 0xe2e   :  { %1419 = vsyncadd [#allocation4], 4294967040 }
 0xe2f   :  { %1149 = vsyncpa [#allocation3], 1 }
 0xe30   :  { %1150 = vsyncpa [#allocation6], 1 }
 0xe31   :  { %1151 = vsyncpa [#allocation4], 1 }

</bundles_post_ra>
